<compile_context>
chip_gen: v7x
topology: tpu7x:2x2x1
jax: 0.10.0
libtpu: 0.0.40
codegen_flags: <defaults>
</compile_context>

<pallas_src>
import functools

import jax
import jax.numpy as jnp
from jax import lax
from jax.experimental import pallas as pl
from jax.experimental.pallas import tpu as pltpu


def lstm_disc_kernel(x_ref, p_ref, o_ref, *, hidden_size, input_size):
    """Single-timestep 2-layer LSTM + Linear + sigmoid; batch on lanes; all in VMEM.

    Shapes (TB = batch tile, I = input_size, H = hidden_size):
      x_ref : (TB, I)                 batch on sublanes (as stored in HBM, no transpose)
      p_ref : (7H+1, max(I,H)+1)      packed params:
                rows 0:3H   cols 0:I   -> w0 (i/o rows pre-scaled by 0.5)
                rows 0:3H   col  I     -> b0 = b_ih0+b_hh0 (i/o rows pre-scaled by 0.5)
                rows 3H:6H  cols 0:H   -> w1 (same scaling)
                rows 3H:6H  col  H     -> b1 (same scaling)
                rows 6H:7H  col  0     -> 0.5 * w_fc
                row  7H     col  0     -> 0.5 * b_fc
      o_ref : (1, TB)                 lane-dense output row
    Gate rows are packed [i, g, o]; the PyTorch f-gate is dead at t=0 with c0 = 0.
    """
    H, I = hidden_size, input_size
    x = x_ref[...]                                                     # (TB, I)

    w0 = p_ref[0:3 * H, 0:I]                                           # (3H, I)
    b0 = p_ref[0:3 * H, I:I + 1]                                       # (3H, 1)
    w1 = p_ref[3 * H:6 * H, 0:H]                                       # (3H, H)
    b1 = p_ref[3 * H:6 * H, H:H + 1]                                   # (3H, 1)
    wfc = p_ref[6 * H:7 * H, 0:1]                                      # (H, 1)
    bfc = p_ref[7 * H:7 * H + 1, 0:1]                                  # (1, 1)

    # ----- LSTM layer 0 (h_prev = c_prev = 0) -----
    # Contract the last dims of both operands so batch lands on the lane axis.
    g0 = lax.dot_general(w0, x, (((1,), (1,)), ((), ())),
                         preferred_element_type=jnp.float32) + b0      # (3H, TB)
    # sigmoid(z) = 0.5*tanh(0.5*z)+0.5; the inner 0.5 is folded into w0/b0 i/o rows.
    i0 = 0.5 * jnp.tanh(g0[0:H, :]) + 0.5
    gg0 = jnp.tanh(g0[H:2 * H, :])
    oo0 = 0.5 * jnp.tanh(g0[2 * H:3 * H, :]) + 0.5
    h1 = oo0 * jnp.tanh(i0 * gg0)                                      # (H, TB)

    # ----- LSTM layer 1 (input h1; its own h_prev = c_prev = 0) -----
    g1 = jnp.dot(w1, h1, preferred_element_type=jnp.float32) + b1      # (3H, TB)
    i1 = 0.5 * jnp.tanh(g1[0:H, :]) + 0.5
    gg1 = jnp.tanh(g1[H:2 * H, :])
    oo1 = 0.5 * jnp.tanh(g1[2 * H:3 * H, :]) + 0.5
    h2 = oo1 * jnp.tanh(i1 * gg1)                                      # (H, TB)

    # ----- fc(H -> 1) + sigmoid: VPU multiply + sublane reduce; 0.5 lives in wfc/bfc --
    z = jnp.sum(h2 * wfc, axis=0, keepdims=True) + bfc                 # (1, TB)
    o_ref[...] = 0.5 * jnp.tanh(z) + 0.5


def lstm_discriminator_forward(x, packed_params, hidden_size, *, tile_b=None):
    """x: (batch, input_size) float32. Returns (batch, 1) float32 in (0, 1)."""
    B, I = x.shape
    H = hidden_size
    if tile_b is None:
        tile_b = 128 if (B % 128 == 0) else B   # lane-dense tiles at production batch
    assert B % tile_b == 0, "batch must be divisible by tile_b"
    grid = (B // tile_b,)

    kernel = functools.partial(lstm_disc_kernel, hidden_size=H, input_size=I)

    # Roofline hint: kernel is transcendental-bound, not FLOP/HBM-bound.
    flops = B * (2 * 3 * H * I + 2 * 3 * H * H + 2 * H)
    transcendentals = B * (8 * H + 1)
    bytes_accessed = 4 * (B * I + int(packed_params.size) + B)

    out = pl.pallas_call(
        kernel,
        out_shape=jax.ShapeDtypeStruct((1, B), jnp.float32),
        grid=grid,
        in_specs=[
            pl.BlockSpec((tile_b, I), lambda i: (i, 0)),           # x: tiled over batch
            pl.BlockSpec(packed_params.shape, lambda i: (0, 0)),   # weights: resident
        ],
        out_specs=pl.BlockSpec((1, tile_b), lambda i: (0, i)),     # lane-dense output
        compiler_params=pltpu.CompilerParams(
            dimension_semantics=("parallel",)),                    # v7x 2-TC sharding
        cost_estimate=pl.CostEstimate(flops=flops,
                                      transcendentals=transcendentals,
                                      bytes_accessed=bytes_accessed),
    )(x, packed_params)
    # (1, B) single row -> (B, 1): pure reshape, no data movement.
    return out.reshape(B, 1)


def init_torch_like_params(key, input_size, hidden_size):
    """Raw PyTorch-shaped params, uniform(-1/sqrt(H), 1/sqrt(H)) like nn.LSTM/nn.Linear."""
    H = hidden_size
    bound = 1.0 / float(jnp.sqrt(jnp.float32(H)))
    keys = jax.random.split(key, 10)

    def u(k, shape):
        return jax.random.uniform(k, shape, jnp.float32, -bound, bound)

    return {
        "w_ih_l0": u(keys[0], (4 * H, input_size)),
        "w_hh_l0": u(keys[1], (4 * H, H)),
        "b_ih_l0": u(keys[2], (4 * H,)),
        "b_hh_l0": u(keys[3], (4 * H,)),
        "w_ih_l1": u(keys[4], (4 * H, H)),
        "w_hh_l1": u(keys[5], (4 * H, H)),
        "b_ih_l1": u(keys[6], (4 * H,)),
        "b_hh_l1": u(keys[7], (4 * H,)),
        "w_fc":    u(keys[8], (1, H)),
        "b_fc":    u(keys[9], (1,)),
    }


def pack_params_for_kernel(p, input_size, hidden_size):
    """Drop dead f-gate rows, fold b_ih+b_hh, fold the sigmoid 0.5 pre-scale into the
    i/o gate rows and the fc weights, and pack everything into ONE (7H+1, W) buffer."""
    H, I = hidden_size, input_size

    def take_igo(a):  # PyTorch gate order is [i, f, g, o]; keep [i, g, o]
        return jnp.concatenate([a[0:H], a[2 * H:3 * H], a[3 * H:4 * H]], axis=0)

    def scale_io_rows(blk):  # pre-scale i and o gate rows (weights AND bias col) by 0.5
        scale = jnp.concatenate([jnp.full((H,), 0.5, jnp.float32),
                                 jnp.ones((H,), jnp.float32),
                                 jnp.full((H,), 0.5, jnp.float32)])
        return blk * scale[:, None]

    w0 = take_igo(p["w_ih_l0"])                                    # (3H, I)
    b0 = take_igo(p["b_ih_l0"] + p["b_hh_l0"])[:, None]            # (3H, 1)
    blk0 = scale_io_rows(jnp.concatenate([w0, b0], axis=1))        # (3H, I+1)

    w1 = take_igo(p["w_ih_l1"])                                    # (3H, H)
    b1 = take_igo(p["b_ih_l1"] + p["b_hh_l1"])[:, None]            # (3H, 1)
    blk1 = scale_io_rows(jnp.concatenate([w1, b1], axis=1))        # (3H, H+1)

    wfc = 0.5 * p["w_fc"].T                                        # (H, 1)
    bfc = 0.5 * p["b_fc"].reshape(1, 1)                            # (1, 1)

    width = max(I + 1, H + 1)

    def pad_cols(a):
        return jnp.pad(a, ((0, 0), (0, width - a.shape[1])))

    packed = jnp.concatenate(
        [pad_cols(blk0), pad_cols(blk1), pad_cols(wfc), pad_cols(bfc)], axis=0)
    return packed.astype(jnp.float32)                              # (7H+1, width)


def reference_forward(x, p, hidden_size):
    """Pure-JAX faithful emulation of the PyTorch module forward (sanity check)."""
    H = hidden_size
    B = x.shape[0]
    hi = jax.lax.Precision.HIGHEST
    h0 = jnp.zeros((B, H), jnp.float32)
    c0 = jnp.zeros((B, H), jnp.float32)

    def cell(inp, h, c, w_ih, w_hh, b_ih, b_hh):
        g = (jnp.dot(inp, w_ih.T, precision=hi)
             + jnp.dot(h, w_hh.T, precision=hi) + b_ih + b_hh)
        i = jax.nn.sigmoid(g[:, 0 * H:1 * H])
        f = jax.nn.sigmoid(g[:, 1 * H:2 * H])
        gg = jnp.tanh(g[:, 2 * H:3 * H])
        o = jax.nn.sigmoid(g[:, 3 * H:4 * H])
        c_new = f * c + i * gg
        return o * jnp.tanh(c_new), c_new

    h1, _ = cell(x, h0, c0, p["w_ih_l0"], p["w_hh_l0"], p["b_ih_l0"], p["b_hh_l0"])
    h2, _ = cell(h1, h0, c0, p["w_ih_l1"], p["w_hh_l1"], p["b_ih_l1"], p["b_hh_l1"])
    return jax.nn.sigmoid(jnp.dot(h2, p["w_fc"].T, precision=hi) + p["b_fc"])


if __name__ == "__main__":
    input_size, hidden_size = 16, 32   # num_layers == 2 (per the module's h0/c0)

    key = jax.random.PRNGKey(0)
    kx_small, kp, kx_big = jax.random.split(key, 3)

    raw_params = init_torch_like_params(kp, input_size, hidden_size)
    packed_params = pack_params_for_kernel(raw_params, input_size, hidden_size)

    # --- toy batch=2: single full-batch tile, degenerate grid=(1,) ---
    x_small = jax.random.normal(kx_small, (2, input_size), jnp.float32)
    out_small = jax.block_until_ready(
        lstm_discriminator_forward(x_small, packed_params, hidden_size))
    ref_small = reference_forward(x_small, raw_params, hidden_size)
    assert out_small.shape == (2, 1), out_small.shape
    assert jnp.allclose(out_small, ref_small, atol=2e-5, rtol=2e-5), (out_small, ref_small)

    # --- production-style batch=256: 128-lane batch grid, resident weights, parallel axis ---
    x_big = jax.random.normal(kx_big, (256, input_size), jnp.float32)
    out_big = jax.block_until_ready(
        lstm_discriminator_forward(x_big, packed_params, hidden_size, tile_b=128))
    ref_big = reference_forward(x_big, raw_params, hidden_size)
    assert out_big.shape == (256, 1), out_big.shape
    assert jnp.allclose(out_big, ref_big, atol=2e-5, rtol=2e-5)

    print("KERNEL_OK")
</pallas_src>

<mosaic_0001>
module attributes {stable_mosaic.version = 11 : i64} {
  func.func @lstm_disc_kernel(%arg0: i32, %arg1: memref<2x16xf32, #tpu.memory_space<vmem>>, %arg2: memref<225x33xf32, #tpu.memory_space<vmem>>, %arg3: memref<1x2xf32, #tpu.memory_space<vmem>>) attributes {dimension_semantics = [#tpu.dimension_semantics<parallel>], iteration_bounds = array<i64: 1>, scalar_prefetch = 0 : i64, scratch_operands = 0 : i64, tpu.core_type = #tpu.core_type<tc>, window_params = [{transform_indices = @transform_0, window_bounds = array<i64: 2, 16>}, {pipeline_mode = #tpu.pipeline_mode<synchronous>, transform_indices = @transform_1, window_bounds = array<i64: 225, 33>}, {transform_indices = @transform_2, window_bounds = array<i64: 1, 2>}]} {
    %c0 = arith.constant 0 : index
    %c0_0 = arith.constant 0 : index
    %0 = vector.load %arg1[%c0, %c0_0] : memref<2x16xf32, #tpu.memory_space<vmem>>, vector<2x16xf32>
    %c0_1 = arith.constant 0 : index
    %c0_2 = arith.constant 0 : index
    %1 = vector.load %arg2[%c0_1, %c0_2] : memref<225x33xf32, #tpu.memory_space<vmem>>, vector<96x16xf32>
    %c0_3 = arith.constant 0 : index
    %c16 = arith.constant 16 : index
    %2 = vector.load %arg2[%c0_3, %c16] : memref<225x33xf32, #tpu.memory_space<vmem>>, vector<96x1xf32>
    %c96 = arith.constant 96 : index
    %c0_4 = arith.constant 0 : index
    %3 = vector.load %arg2[%c96, %c0_4] : memref<225x33xf32, #tpu.memory_space<vmem>>, vector<96x32xf32>
    %c96_5 = arith.constant 96 : index
    %c32 = arith.constant 32 : index
    %4 = vector.load %arg2[%c96_5, %c32] : memref<225x33xf32, #tpu.memory_space<vmem>>, vector<96x1xf32>
    %c192 = arith.constant 192 : index
    %c0_6 = arith.constant 0 : index
    %5 = vector.load %arg2[%c192, %c0_6] : memref<225x33xf32, #tpu.memory_space<vmem>>, vector<32x1xf32>
    %c224 = arith.constant 224 : index
    %c0_7 = arith.constant 0 : index
    %6 = vector.load %arg2[%c224, %c0_7] : memref<225x33xf32, #tpu.memory_space<vmem>>, vector<1x1xf32>
    %cst = arith.constant dense<0.000000e+00> : vector<96x2xf32>
    %7 = tpu.matmul %1, %0, %cst {dimension_numbers = #tpu.dot_dimension_numbers<[1], [1], [0], [0], [0, 0, 1, 0], [], []>} : vector<96x16xf32>, vector<2x16xf32>, vector<96x2xf32> -> vector<96x2xf32>
    %8 = vector.broadcast %2 : vector<96x1xf32> to vector<96x2xf32>
    %9 = arith.addf %7, %8 : vector<96x2xf32>
    %10 = vector.extract_strided_slice %9 {offsets = [0, 0], sizes = [32, 2], strides = [1, 1]} : vector<96x2xf32> to vector<32x2xf32>
    %11 = math.tanh %10 : vector<32x2xf32>
    %cst_8 = arith.constant 5.000000e-01 : f32
    %12 = vector.broadcast %cst_8 : f32 to vector<32x2xf32>
    %13 = arith.mulf %12, %11 : vector<32x2xf32>
    %cst_9 = arith.constant 5.000000e-01 : f32
    %14 = vector.broadcast %cst_9 : f32 to vector<32x2xf32>
    %15 = arith.addf %13, %14 : vector<32x2xf32>
    %16 = vector.extract_strided_slice %9 {offsets = [32, 0], sizes = [32, 2], strides = [1, 1]} : vector<96x2xf32> to vector<32x2xf32>
    %17 = math.tanh %16 : vector<32x2xf32>
    %18 = vector.extract_strided_slice %9 {offsets = [64, 0], sizes = [32, 2], strides = [1, 1]} : vector<96x2xf32> to vector<32x2xf32>
    %19 = math.tanh %18 : vector<32x2xf32>
    %cst_10 = arith.constant 5.000000e-01 : f32
    %20 = vector.broadcast %cst_10 : f32 to vector<32x2xf32>
    %21 = arith.mulf %20, %19 : vector<32x2xf32>
    %cst_11 = arith.constant 5.000000e-01 : f32
    %22 = vector.broadcast %cst_11 : f32 to vector<32x2xf32>
    %23 = arith.addf %21, %22 : vector<32x2xf32>
    %24 = arith.mulf %15, %17 : vector<32x2xf32>
    %25 = math.tanh %24 : vector<32x2xf32>
    %26 = arith.mulf %23, %25 : vector<32x2xf32>
    %cst_12 = arith.constant dense<0.000000e+00> : vector<96x2xf32>
    %27 = tpu.matmul %3, %26, %cst_12 {dimension_numbers = #tpu.dot_dimension_numbers<[1], [0], [0], [1], [0, 0, 1, 1], [], []>} : vector<96x32xf32>, vector<32x2xf32>, vector<96x2xf32> -> vector<96x2xf32>
    %28 = vector.broadcast %4 : vector<96x1xf32> to vector<96x2xf32>
    %29 = arith.addf %27, %28 : vector<96x2xf32>
    %30 = vector.extract_strided_slice %29 {offsets = [0, 0], sizes = [32, 2], strides = [1, 1]} : vector<96x2xf32> to vector<32x2xf32>
    %31 = math.tanh %30 : vector<32x2xf32>
    %cst_13 = arith.constant 5.000000e-01 : f32
    %32 = vector.broadcast %cst_13 : f32 to vector<32x2xf32>
    %33 = arith.mulf %32, %31 : vector<32x2xf32>
    %cst_14 = arith.constant 5.000000e-01 : f32
    %34 = vector.broadcast %cst_14 : f32 to vector<32x2xf32>
    %35 = arith.addf %33, %34 : vector<32x2xf32>
    %36 = vector.extract_strided_slice %29 {offsets = [32, 0], sizes = [32, 2], strides = [1, 1]} : vector<96x2xf32> to vector<32x2xf32>
    %37 = math.tanh %36 : vector<32x2xf32>
    %38 = vector.extract_strided_slice %29 {offsets = [64, 0], sizes = [32, 2], strides = [1, 1]} : vector<96x2xf32> to vector<32x2xf32>
    %39 = math.tanh %38 : vector<32x2xf32>
    %cst_15 = arith.constant 5.000000e-01 : f32
    %40 = vector.broadcast %cst_15 : f32 to vector<32x2xf32>
    %41 = arith.mulf %40, %39 : vector<32x2xf32>
    %cst_16 = arith.constant 5.000000e-01 : f32
    %42 = vector.broadcast %cst_16 : f32 to vector<32x2xf32>
    %43 = arith.addf %41, %42 : vector<32x2xf32>
    %44 = arith.mulf %35, %37 : vector<32x2xf32>
    %45 = math.tanh %44 : vector<32x2xf32>
    %46 = arith.mulf %43, %45 : vector<32x2xf32>
    %47 = vector.broadcast %5 : vector<32x1xf32> to vector<32x2xf32>
    %48 = arith.mulf %46, %47 : vector<32x2xf32>
    %cst_17 = arith.constant dense<0.000000e+00> : vector<2xf32>
    %49 = vector.multi_reduction <add>, %48, %cst_17 [0] : vector<32x2xf32> to vector<2xf32>
    %50 = vector.shape_cast %49 : vector<2xf32> to vector<1x2xf32>
    %51 = vector.broadcast %6 : vector<1x1xf32> to vector<1x2xf32>
    %52 = arith.addf %50, %51 : vector<1x2xf32>
    %53 = math.tanh %52 : vector<1x2xf32>
    %cst_18 = arith.constant 5.000000e-01 : f32
    %54 = vector.broadcast %cst_18 : f32 to vector<1x2xf32>
    %55 = arith.mulf %54, %53 : vector<1x2xf32>
    %cst_19 = arith.constant 5.000000e-01 : f32
    %56 = vector.broadcast %cst_19 : f32 to vector<1x2xf32>
    %57 = arith.addf %55, %56 : vector<1x2xf32>
    %c0_20 = arith.constant 0 : index
    %c0_21 = arith.constant 0 : index
    %58 = vector.load %arg3[%c0_20, %c0_21] : memref<1x2xf32, #tpu.memory_space<vmem>>, vector<1x2xf32>
    tpu.vector_store %arg3[%c0_20, %c0_21], %57 {strides = array<i32>} : memref<1x2xf32, #tpu.memory_space<vmem>>, vector<1x2xf32>,
    return
  }
  func.func @transform_0(%arg0: i32) -> (i32, i32) {
    %c0_i32 = arith.constant 0 : i32
    %c0_i32_0 = arith.constant 0 : i32
    return %arg0, %c0_i32 : i32, i32
  }
  func.func @transform_1(%arg0: i32) -> (i32, i32) {
    %c0_i32 = arith.constant 0 : i32
    %c0_i32_0 = arith.constant 0 : i32
    %c0_i32_1 = arith.constant 0 : i32
    return %c0_i32, %c0_i32_0 : i32, i32
  }
  func.func @transform_2(%arg0: i32) -> (i32, i32) {
    %c0_i32 = arith.constant 0 : i32
    %c0_i32_0 = arith.constant 0 : i32
    return %c0_i32, %arg0 : i32, i32
  }
}

</mosaic_0001>

<bundles_post_ra>
// kernel: tpu_custom_call.1
= control target key start
LH: loop header
LB: loop body
LE: loop exit
PB: predicated region body
PF: predicated region fallthrough
CT: control target
= control target key end

     0   :  { %vm102_vm0 = vcmask 130048   ;;  %v816_v4 = vmov 16   ;;  %s1011_s0 = inlined_call_operand.vmem [shape: f32[2,16], index: 0, kind: input, shape index: {}]   ;;  %s1012_s1 = inlined_call_operand.vmem [shape: f32[225,33], index: 1, kind: input, shape index: {}]   ;;  %s1013_s2 = inlined_call_operand.hbm [shape: f32[1,2], index: 2, kind: output, shape index: {}]  }
   0x1   :  { %v12_v0 = vld [vmem:[%s1011_s0] sm:$0x3]  ;;  %v14_v2 = vld [vmem:[%s1012_s1 + $0x8] sm:$0xff]  ;;  %v15_v3 = vld [vmem:[%s1012_s1 + $0x10] sm:$0xff]  ;;  %721 = vset.pattern.permute.xlu1 %v816_v4  ;;  %720 = vset.pattern.permute.xlu0 %v816_v4 }
   0x2   :  { %v13_v1 = vld [vmem:[%s1012_s1] sm:$0xff]  ;;  %662 = vmatprep.subr.msk.mxu0 %vm102_vm0, %v12_v0  ;;  %54 = vperm.xlu1 %721, %v15_v3  }
   0x3   :  { %664 = vmatprep.mubr.msk.f32.mxu0 %vm102_vm0, %v13_v1  ;;  %663 = vmatpush3.xpose.msk.msra.mxu0 %vm102_vm0, %v12_v0 }
   0x4   :  { %44 = vperm.xlu0 %720, %v13_v1  }
   0x5   :  { %7 = vsyncpa [#allocation3], 0  ;;  %v16_v5 = vld [vmem:[%s1012_s1 + $0x18] sm:$0xff]  ;;  %v17_v6 = vld [vmem:[%s1012_s1 + $0x20] sm:$0xff]  ;;  %vm355_vm1 = vcmask 261120   ;;  %v817_v16 = vmov 32  }
   0x6   :  { %665 = vmatmul.mubr.msk.f32.vlgmr.msra.gmra.mrb[0].mxu0 %vm102_vm0, %v14_v2  ;;  %59 = vperm.xlu1 %721, %v16_v5   ;;  %v18_v7 = vld [vmem:[%s1012_s1 + $0x28] sm:$0xff]  ;;  %v19_v8 = vld [vmem:[%s1012_s1 + $0x30] sm:$0xff]  ;;  %v20_v9 = vld [vmem:[%s1012_s1 + $0x38] sm:$0xff]  ;;  %v818_v29 = vmov 0   ;;  %vm569_vm2 = vcmask 15360   ;;  %vm592_vm3 = vcmask 8192  }
   0x7   :  { %667 = vmatprep.mubr.msk.f32.mxu0 %vm102_vm0, %v15_v3  ;;  %v21_v10 = vld [vmem:[%s1012_s1 + $0x40] sm:$0xff]  ;;  %v22_v11 = vld [vmem:[%s1012_s1 + $0x48] sm:$0xff]  ;;  %v23_v12 = vld [vmem:[%s1012_s1 + $0x50] sm:$0xff] }
   0x8   :  { %49 = vperm.xlu0 %720, %v14_v2   ;;  %v24_v13 = vld [vmem:[%s1012_s1 + $0x58] sm:$0xff]  ;;  %v25_v14 = vld [vmem:[%s1012_s1 + $0x60] sm:$0xff]  ;;  %v895_v15 = vld [vmem:[%s1012_s1 + $0x68] sm:$0xff] }
   0x9   :  { %690 = vmatprep.mubr.msk.f32.mxu1 %vm355_vm1, %v25_v14  ;;  %v901_v17 = vld [vmem:[%s1012_s1 + $0x70] sm:$0xff]  ;;  %v906_v18 = vld [vmem:[%s1012_s1 + $0x78] sm:$0xff]  ;;  %v913_v19 = vld [vmem:[%s1012_s1 + $0x80] sm:$0xff] }
   0xa   :  { %668 = vmatmul.mubr.msk.f32.gmra.mrb[2].mxu0 %vm102_vm0, %v16_v5  ;;  %69 = vperm.xlu1 %721, %v18_v7   ;;  %v918_v20 = vld [vmem:[%s1012_s1 + $0x88] sm:$0xff]  ;;  %v925_v21 = vld [vmem:[%s1012_s1 + $0x90] sm:$0xff]  ;;  %v930_v22 = vld [vmem:[%s1012_s1 + $0x98] sm:$0xff] }
   0xb   :  { %670 = vmatprep.mubr.msk.f32.mxu0 %vm102_vm0, %v17_v6  ;;  %v937_v23 = vld [vmem:[%s1012_s1 + $0xa0] sm:$0xff]  ;;  %v942_v24 = vld [vmem:[%s1012_s1 + $0xa8] sm:$0xff]  ;;  %v949_v25 = vld [vmem:[%s1012_s1 + $0xb0] sm:$0xff] }
   0xc   :  { %64 = vperm.xlu0 %720, %v17_v6   ;;  %v954_v26 = vld [vmem:[%s1012_s1 + $0xb8] sm:$0xff]  ;;  %v37_v27 = vld [vmem:[%s1012_s1 + $0xc0] sm:$0xff]  ;;  %v38_v28 = vld [vmem:[%s1012_s1 + $0xc8] sm:$0xff] }
   0xd   :  { %v39_v30 = vld [vmem:[%s1012_s1 + $0xd0] sm:$0xff]  ;;  %v41_v31 = vld [vmem:[%s1012_s1 + $0xe0] sm:$0x1]  ;;  %v40_v32 = vld [vmem:[%s1012_s1 + $0xd8] sm:$0xff]  ;;  %s819_s1 = smov [#allocation2]  }
   0xe   :  { %671 = vmatmul.mubr.msk.f32.gmra.mrb[4].mxu0 %vm102_vm0, %v18_v7  ;;  %79 = vperm.xlu1 %721, %v20_v9   ;;  %s600_s11 = sshll.u32 %s819_s1, 4  ;;  %s601_s11 = int_to_ptr.vmem [resolvable:$true] %s600_s11 }
   0xf   :  { %673 = vmatprep.mubr.msk.f32.mxu0 %vm102_vm0, %v19_v8  ;;  %s792_s12 = scalar_lea.vmem %s601_s11, 16  ;;  %s796_s13 = scalar_lea.vmem %s601_s11, 32 }
  0x10   :  { %74 = vperm.xlu0 %720, %v19_v8   ;;  %p793_p0 = scmp.ne.s32.totalorder %s601_s11, %s792_s12  ;;  %p797_p1 = scmp.lt.s32.totalorder %s601_s11, %s601_s11 }
  0x11   :  { %p798_p2 = scmp.lt.s32.totalorder %s796_s13, %s792_s12 }
  0x12   :  { %674 = vmatmul.mubr.msk.f32.gmra.mrb[6].mxu0 %vm102_vm0, %v20_v9  ;;  %89 = vperm.xlu1 %721, %v22_v11  }
  0x13   :  { %676 = vmatprep.mubr.msk.f32.mxu0 %vm102_vm0, %v21_v10  ;;  %p799_p3 = por %p798_p2, %p797_p1 }
  0x14   :  { %84 = vperm.xlu0 %720, %v21_v10  }
  0x15   :  { %p800_p4 = pnand %p799_p3, %p793_p0 }
  0x16   :  { %677 = vmatmul.mubr.msk.f32.gmra.mrb[8].mxu0 %vm102_vm0, %v22_v11  ;;  %99 = vperm.xlu1 %721, %v24_v13  }
  0x17   :  { %679 = vmatprep.mubr.msk.f32.mxu0 %vm102_vm0, %v23_v12 }
  0x18   :  { %94 = vperm.xlu0 %720, %v23_v12  }
  0x1a   :  { %680 = vmatmul.mubr.msk.f32.gmra.mrb[10].mxu0 %vm102_vm0, %v24_v13  ;;  %723 = vset.pattern.permute.xlu1 %v817_v16 }
  0x1b   :  { %302 = vperm.xlu1 %723, %v895_v15  }
  0x1c   :  { %722 = vset.pattern.permute.xlu0 %v817_v16 }
  0x1d   :  { %297 = vperm.xlu0 %722, %v25_v14  }
  0x1f   :  { %307 = vperm.xlu1 %723, %v901_v17  }
  0x21   :  { %312 = vperm.xlu0 %722, %v906_v18  }
  0x23   :  { %317 = vperm.xlu1 %723, %v913_v19  }
  0x25   :  { %322 = vperm.xlu0 %722, %v918_v20  }
  0x27   :  { %327 = vperm.xlu1 %723, %v925_v21  }
  0x29   :  { %332 = vperm.xlu0 %722, %v930_v22  }
  0x2b   :  { %337 = vperm.xlu1 %723, %v937_v23  }
  0x2d   :  { %342 = vperm.xlu0 %722, %v942_v24  }
  0x2f   :  { %347 = vperm.xlu1 %723, %v949_v25  }
  0x31   :  { %352 = vperm.xlu0 %722, %v954_v26  }
  0x33   :  { %724 = vset.pattern.permute.xlu1 %v818_v29 }
  0x34   :  { %547 = vperm.xlu1 %724, %v37_v27  }
  0x35   :  { %725 = vset.pattern.permute.xlu0 %v818_v29 }
  0x36   :  { %552 = vperm.xlu0 %725, %v38_v28  }
  0x38   :  { %557 = vperm.xlu1 %724, %v39_v30  }
  0x3a   :  { %585 = vperm.xlu0 %725, %v41_v31  }
  0x3c   :  { %562 = vperm.xlu1 %724, %v40_v32  }
  0x81   :  { %v55_v33 = vpop.permute.xlu1 %54 }
  0x83   :  { %v45_v34 = vpop.permute.xlu0 %44 }
  0x85   :  { %v60_v35 = vpop.permute.xlu1 %59 }
  0x87   :  { %v50_v36 = vpop.permute.xlu0 %49 }
  0x89   :  { %v70_v40 = vpop.permute.xlu1 %69 }
  0x8b   :  { %v65_v42 = vpop.permute.xlu0 %64 }
  0x8d   :  { %v80_v47 = vpop.permute.xlu1 %79 }
  0x8f   :  { %v75_v49 = vpop.permute.xlu0 %74 }
  0x91   :  { %v90_v58 = vpop.permute.xlu1 %89 }
  0x93   :  { %v85_v60 = vpop.permute.xlu0 %84 }
  0x95   :  { %v100_v6 = vpop.permute.xlu1 %99 }
  0x97   :  { %v95_v10 = vpop.permute.xlu0 %94 }
  0xd9   :  { %v666_v37 = vpop.f32.mrb[0].mxu0 }
  0xda   :  { %v202_v38 = vadd.f32 %v666_v37, %v50_v36  ;;  %v196_v39 = vpop.f32.mrb[1].mxu0 }
  0xdb   :  { %v197_v41 = vadd.f32 %v196_v39, %v45_v34 }
  0xdc   :  { %726 = vtanh.f32 %v202_v38 }
  0xdd   :  { %728 = vtanh.f32 %v197_v41  ;;  %v669_v43 = vpop.f32.mrb[2].mxu0 }
  0xde   :  { %v212_v44 = vadd.f32 %v669_v43, %v60_v35  ;;  %v206_v45 = vpop.f32.mrb[3].mxu0 }
  0xdf   :  { %v207_v46 = vadd.f32 %v206_v45, %v55_v33 }
  0xe0   :  { %730 = vtanh.f32 %v212_v44 }
  0xe1   :  { %732 = vtanh.f32 %v207_v46  ;;  %v672_v48 = vpop.f32.mrb[4].mxu0 }
  0xe2   :  { %v222_v50 = vadd.f32 %v672_v48, %v70_v40  ;;  %v216_v51 = vpop.f32.mrb[5].mxu0 }
  0xe3   :  { %v217_v52 = vadd.f32 %v216_v51, %v65_v42 }
  0xe4   :  { %734 = vtanh.f32 %v222_v50 }
  0xe5   :  { %736 = vtanh.f32 %v217_v52  ;;  %v675_v53 = vpop.f32.mrb[6].mxu0 }
  0xe6   :  { %v727_v54 = vpop.eup %726  ;;  %v232_v55 = vadd.f32 %v675_v53, %v80_v47  ;;  %v226_v56 = vpop.f32.mrb[7].mxu0 }
  0xe7   :  { %v729_v57 = vpop.eup %728  ;;  %v227_v59 = vadd.f32 %v226_v56, %v75_v49  ;;  %v260_v61 = vmul.f32 0.5, %v727_v54 }
  0xe8   :  { %738 = vtanh.f32 %v232_v55  ;;  %v259_v0 = vmul.f32 0.5, %v729_v57 }
  0xe9   :  { %740 = vtanh.f32 %v227_v59  ;;  %v678_v62 = vpop.f32.mrb[8].mxu0  ;;  %v264_v5 = vadd.f32 0.5, %v260_v61 }
  0xea   :  { %v731_v63 = vpop.eup %730  ;;  %v242_v1 = vadd.f32 %v678_v62, %v90_v58  ;;  %v236_v2 = vpop.f32.mrb[9].mxu0  ;;  %v263_v11 = vadd.f32 0.5, %v259_v0 }
  0xeb   :  { %v733_v3 = vpop.eup %732  ;;  %v237_v4 = vadd.f32 %v236_v2, %v85_v60  ;;  %v262_v7 = vmul.f32 0.5, %v731_v63 }
  0xec   :  { %742 = vtanh.f32 %v242_v1  ;;  %v261_v12 = vmul.f32 0.5, %v733_v3 }
  0xed   :  { %744 = vtanh.f32 %v237_v4  ;;  %v681_v8 = vpop.f32.mrb[10].mxu0  ;;  %v266_v30 = vadd.f32 0.5, %v262_v7 }
  0xee   :  { %v735_v9 = vpop.eup %734  ;;  %v252_v13 = vadd.f32 %v681_v8, %v100_v6  ;;  %v246_v14 = vpop.f32.mrb[11].mxu0  ;;  %v265_v32 = vadd.f32 0.5, %v261_v12 }
  0xef   :  { %v737_v16 = vpop.eup %736  ;;  %v284_v27 = vmul.f32 %v735_v9, %v264_v5  ;;  %v247_v28 = vadd.f32 %v246_v14, %v95_v10 }
  0xf0   :  { %v283_v29 = vmul.f32 %v737_v16, %v263_v11  ;;  %746 = vtanh.f32 %v252_v13 }
  0xf1   :  { %748 = vtanh.f32 %v284_v27 }
  0xf2   :  { %v739_v31 = vpop.eup %738  ;;  %750 = vtanh.f32 %v283_v29 }
  0xf3   :  { %v741_v33 = vpop.eup %740  ;;  %v286_v34 = vmul.f32 %v739_v31, %v266_v30  ;;  %752 = vtanh.f32 %v247_v28 }
  0xf4   :  { %v285_v35 = vmul.f32 %v741_v33, %v265_v32 }
  0xf5   :  { %754 = vtanh.f32 %v286_v34 }
  0xf6   :  { %v743_v36 = vpop.eup %742  ;;  %756 = vtanh.f32 %v285_v35 }
  0xf7   :  { %v745_v37 = vpop.eup %744  ;;  %v276_v38 = vmul.f32 0.5, %v743_v36 }
  0xf8   :  { %v275_v39 = vmul.f32 0.5, %v745_v37 }
  0xf9   :  { %v280_v40 = vadd.f32 0.5, %v276_v38 }
  0xfa   :  { %v747_v41 = vpop.eup %746  ;;  %v279_v42 = vadd.f32 0.5, %v275_v39 }
  0xfb   :  { %v749_v43 = vpop.eup %748  ;;  %v278_v44 = vmul.f32 0.5, %v747_v41 }
  0xfc   :  { %v751_v45 = vpop.eup %750  ;;  %v292_v46 = vmul.f32 %v749_v43, %v280_v40 }
  0xfd   :  { %v753_v47 = vpop.eup %752  ;;  %v282_v48 = vadd.f32 0.5, %v278_v44  ;;  %v291_v49 = vmul.f32 %v751_v45, %v279_v42 }
  0xfe   :  { %v277_v50 = vmul.f32 0.5, %v753_v47 }
  0xff   :  { %v755_v51 = vpop.eup %754  ;;  %v708_v52 = vpack.c.bf16 %v292_v46, %v291_v49 }
 0x100   :  { %v757_v53 = vpop.eup %756  ;;  %v281_v54 = vadd.f32 0.5, %v277_v50  ;;  %v294_v55 = vmul.f32 %v755_v51, %v282_v48 }
 0x101   :  { %709 = vmatprep.subr.bf16.mxu1 %v708_v52 }
 0x102   :  { %711 = vmatpush3.bf16.msra.mxu1 %v708_v52  ;;  %v293_v56 = vmul.f32 %v757_v53, %v281_v54 }
 0x104   :  { %v712_v57 = vpack.c.bf16 %v294_v55, %v293_v56 }
 0x106   :  { %713 = vmatprep.subr.bf16.mxu1 %v712_v57 }
 0x107   :  { %715 = vmatpush3.bf16.msra.mxu1 %v712_v57 }
 0x10a   :  { %691 = vmatmul.mubr.msk.f32.vlgmr.msra.gmra.mrb[0].mxu1 %vm355_vm1, %v895_v15  ;;  %v298_v15 = vpop.permute.xlu0 %297 }
 0x10b   :  { %693 = vmatprep.mubr.msk.f32.mxu1 %vm355_vm1, %v901_v17  ;;  %v303_v17 = vpop.permute.xlu1 %302 }
 0x10e   :  { %694 = vmatmul.mubr.msk.f32.gmra.mrb[2].mxu1 %vm355_vm1, %v906_v18  ;;  %v313_v18 = vpop.permute.xlu0 %312 }
 0x10f   :  { %696 = vmatprep.mubr.msk.f32.mxu1 %vm355_vm1, %v913_v19  ;;  %v308_v19 = vpop.permute.xlu1 %307 }
 0x112   :  { %697 = vmatmul.mubr.msk.f32.gmra.mrb[4].mxu1 %vm355_vm1, %v918_v20 }
 0x113   :  { %699 = vmatprep.mubr.msk.f32.mxu1 %vm355_vm1, %v925_v21  ;;  %v318_v60 = vpop.permute.xlu1 %317 }
 0x116   :  { %700 = vmatmul.mubr.msk.f32.gmra.mrb[6].mxu1 %vm355_vm1, %v930_v22  ;;  %v323_v22 = vpop.permute.xlu0 %322 }
 0x117   :  { %702 = vmatprep.mubr.msk.f32.mxu1 %vm355_vm1, %v937_v23  ;;  %v328_v63 = vpop.permute.xlu1 %327 }
 0x11a   :  { %703 = vmatmul.mubr.msk.f32.gmra.mrb[8].mxu1 %vm355_vm1, %v942_v24 }
 0x11b   :  { %705 = vmatprep.mubr.msk.f32.mxu1 %vm355_vm1, %v949_v25  ;;  %v333_v25 = vpop.permute.xlu0 %332  ;;  %v338_v10 = vpop.permute.xlu1 %337 }
 0x11e   :  { %706 = vmatmul.mubr.msk.f32.gmra.mrb[10].mxu1 %vm355_vm1, %v954_v26 }
 0x11f   :  { %v343_v8 = vpop.permute.xlu0 %342  ;;  %v348_v35 = vpop.permute.xlu1 %347 }
 0x123   :  { %v353_v31 = vpop.permute.xlu0 %352  ;;  %v548_v53 = vpop.permute.xlu1 %547 }
 0x1dd   :  { %v692_v20 = vpop.f32.mrb[0].mxu1 }
 0x1de   :  { %v452_v21 = vadd.f32 %v692_v20, %v303_v17  ;;  %v446_v58 = vpop.f32.mrb[1].mxu1 }
 0x1df   :  { %v447_v59 = vadd.f32 %v446_v58, %v298_v15 }
 0x1e0   :  { %758 = vtanh.f32 %v452_v21 }
 0x1e1   :  { %760 = vtanh.f32 %v447_v59  ;;  %v695_v23 = vpop.f32.mrb[2].mxu1  ;;  %v558_v59 = vpop.permute.xlu1 %557 }
 0x1e2   :  { %v462_v24 = vadd.f32 %v695_v23, %v313_v18  ;;  %v456_v61 = vpop.f32.mrb[3].mxu1  ;;  %v553_v18 = vpop.permute.xlu0 %552 }
 0x1e3   :  { %v457_v62 = vadd.f32 %v456_v61, %v308_v19 }
 0x1e4   :  { %762 = vtanh.f32 %v462_v24 }
 0x1e5   :  { %764 = vtanh.f32 %v457_v62  ;;  %v698_v26 = vpop.f32.mrb[4].mxu1 }
 0x1e6   :  { %v472_v0 = vadd.f32 %v698_v26, %v323_v22  ;;  %v466_v1 = vpop.f32.mrb[5].mxu1 }
 0x1e7   :  { %v467_v2 = vadd.f32 %v466_v1, %v318_v60 }
 0x1e8   :  { %766 = vtanh.f32 %v472_v0 }
 0x1e9   :  { %768 = vtanh.f32 %v467_v2  ;;  %v701_v3 = vpop.f32.mrb[6].mxu1 }
 0x1ea   :  { %v759_v4 = vpop.eup %758  ;;  %v482_v5 = vadd.f32 %v701_v3, %v333_v25  ;;  %v476_v6 = vpop.f32.mrb[7].mxu1 }
 0x1eb   :  { %v761_v7 = vpop.eup %760  ;;  %v477_v9 = vadd.f32 %v476_v6, %v328_v63  ;;  %v510_v11 = vmul.f32 0.5, %v759_v4  ;;  %v563_v3 = vpop.permute.xlu1 %562 }
 0x1ec   :  { %770 = vtanh.f32 %v482_v5  ;;  %v509_v14 = vmul.f32 0.5, %v761_v7 }
 0x1ed   :  { %772 = vtanh.f32 %v477_v9  ;;  %v704_v12 = vpop.f32.mrb[8].mxu1  ;;  %v514_v30 = vadd.f32 0.5, %v510_v11 }
 0x1ee   :  { %v763_v13 = vpop.eup %762  ;;  %v492_v16 = vadd.f32 %v704_v12, %v343_v8  ;;  %v486_v27 = vpop.f32.mrb[9].mxu1  ;;  %v513_v36 = vadd.f32 0.5, %v509_v14 }
 0x1ef   :  { %v765_v28 = vpop.eup %764  ;;  %v487_v29 = vadd.f32 %v486_v27, %v338_v10  ;;  %v512_v32 = vmul.f32 0.5, %v763_v13  ;;  %v586_v27 = vpop.permute.xlu0 %585 }
 0x1f0   :  { %774 = vtanh.f32 %v492_v16  ;;  %v511_v37 = vmul.f32 0.5, %v765_v28 }
 0x1f1   :  { %776 = vtanh.f32 %v487_v29  ;;  %v707_v33 = vpop.f32.mrb[10].mxu1  ;;  %v516_v44 = vadd.f32 0.5, %v512_v32 }
 0x1f2   :  { %v767_v34 = vpop.eup %766  ;;  %v502_v38 = vadd.f32 %v707_v33, %v353_v31  ;;  %v496_v39 = vpop.f32.mrb[11].mxu1  ;;  %v515_v46 = vadd.f32 0.5, %v511_v37 }
 0x1f3   :  { %v769_v40 = vpop.eup %768  ;;  %v534_v41 = vmul.f32 %v767_v34, %v514_v30  ;;  %v497_v42 = vadd.f32 %v496_v39, %v348_v35 }
 0x1f4   :  { %v533_v43 = vmul.f32 %v769_v40, %v513_v36  ;;  %778 = vtanh.f32 %v502_v38 }
 0x1f5   :  { %780 = vtanh.f32 %v534_v41 }
 0x1f6   :  { %v771_v45 = vpop.eup %770  ;;  %782 = vtanh.f32 %v533_v43 }
 0x1f7   :  { %v773_v47 = vpop.eup %772  ;;  %v536_v48 = vmul.f32 %v771_v45, %v516_v44  ;;  %784 = vtanh.f32 %v497_v42 }
 0x1f8   :  { %v535_v49 = vmul.f32 %v773_v47, %v515_v46 }
 0x1f9   :  { %786 = vtanh.f32 %v536_v48 }
 0x1fa   :  { %v775_v50 = vpop.eup %774  ;;  %788 = vtanh.f32 %v535_v49 }
 0x1fb   :  { %v777_v51 = vpop.eup %776  ;;  %v526_v52 = vmul.f32 0.5, %v775_v50 }
 0x1fc   :  { %v525_v54 = vmul.f32 0.5, %v777_v51 }
 0x1fd   :  { %v530_v55 = vadd.f32 0.5, %v526_v52 }
 0x1fe   :  { %v779_v56 = vpop.eup %778  ;;  %v529_v57 = vadd.f32 0.5, %v525_v54 }
 0x1ff   :  { %v781_v15 = vpop.eup %780  ;;  %v528_v17 = vmul.f32 0.5, %v779_v56 }
 0x200   :  { %v783_v19 = vpop.eup %782  ;;  %v542_v20 = vmul.f32 %v781_v15, %v530_v55 }
 0x201   :  { %v785_v21 = vpop.eup %784  ;;  %v532_v58 = vadd.f32 0.5, %v528_v17  ;;  %v541_v22 = vmul.f32 %v783_v19, %v529_v57 }
 0x202   :  { %v527_v60 = vmul.f32 0.5, %v785_v21  ;;  %v566_v23 = vmul.f32 %v553_v18, %v542_v20 }
 0x203   :  { %v787_v24 = vpop.eup %786  ;;  %v565_v61 = vmul.f32 %v548_v53, %v541_v22 }
 0x204   :  { %v789_v62 = vpop.eup %788  ;;  %v531_v25 = vadd.f32 0.5, %v527_v60  ;;  %v544_v26 = vmul.f32 %v787_v24, %v532_v58  ;;  %v571_v63 = vsel %vm569_vm2, %v566_v23, 0.0 }
 0x205   :  { %v570_v0 = vsel %vm569_vm2, %v565_v61, 0.0 }
 0x206   :  { %v543_v1 = vmul.f32 %v789_v62, %v531_v25  ;;  %v572_v2 = vadd.f32 %v571_v63, %v570_v0  ;;  %v568_v5 = vmul.f32 %v563_v3, %v544_v26 }
 0x208   :  { %v567_v4 = vmul.f32 %v558_v59, %v543_v1  ;;  %v575_v8 = vsel %vm569_vm2, %v568_v5, 0.0 }
 0x20a   :  { %v573_v6 = vsel %vm569_vm2, %v567_v4, 0.0 }
 0x20b   :  { %v574_v7 = vadd.f32 %v573_v6, %v572_v2 }
 0x20d   :  { %v576_v9 = vadd.f32 %v575_v8, %v574_v7 }
 0x20f   :  { %v577_v10 = vrot.slane %v576_v9, 4 }
 0x211   :  { %v578_v11 = vadd.f32 %v577_v10, %v576_v9 }
 0x213   :  { %v579_v12 = vrot.slane %v578_v11, 2 }
 0x215   :  { %v580_v13 = vadd.f32 %v579_v12, %v578_v11 }
 0x217   :  { %v581_v14 = vrot.slane %v580_v13, 1 }
 0x219   :  { %v582_v16 = vadd.f32 %v581_v14, %v580_v13 }
 0x21b   :  { %v588_v28 = vadd.f32 %v586_v27, %v582_v16 }
 0x21d   :  { %790 = vtanh.f32 %v588_v28 }
 0x227   :  { %v791_v29 = vpop.eup %790 }
 0x228   :  { %v590_v30 = vmul.f32 0.5, %v791_v29 }
 0x22a   :  { %v591_v31 = vadd.f32 0.5, %v590_v30 }
 0x22c   :  { %593 = vst.msk [vmem:[#allocation2] sm:$0x1] %vm592_vm3, %v591_v31 }
 0x22d   :  { %803 = shalt.err (!%p800_p4)
}
 0x22e   :  { %s804_s16 = scalar_lea.hbm %s1013_s2, 16 }
 0x22f   :  { %p805_p5 = scmp.ne.s32.totalorder %s1013_s2, %s804_s16  ;;  %p808_p6 = scmp.lt.u32.totalorder %s804_s16, %s1013_s2 }
 0x231   :  { %p810_p7 = pnand %p808_p6, %p805_p5 }
 0x233   :  { %813 = shalt.err (!%p810_p7)
}
 0x234   :  { %603 = dma.vmem_to_hbm [thread:$0]  %s601_s11, 16, %s1013_s2, [#allocation3]  }
 0x235   :  { %814 = dma.done.wait [#allocation3], 16  }
 0x236   :  { %815 = vsyncadd [#allocation3], 4294967280 }
 0x237   :  { %607 = vsyncpa [#allocation3], 1 }

</bundles_post_ra>
